<compile_context>
chip_gen: v6e
topology: v6e:2x2x1
jax: 0.10.0
libtpu: 0.0.40
codegen_flags: <defaults>
</compile_context>

<pallas_src>
import functools

import jax
import jax.numpy as jnp
from jax import lax
from jax.experimental import pallas as pl
from jax.experimental.pallas import tpu as pltpu

LEAKY_SLOPE = 0.01  # nn.LeakyReLU() default negative_slope
BN_EPS = 1e-5       # nn.BatchNorm3d default eps


def _round_up(x, m):
    return (x + m - 1) // m * m


def _matmul_bn_lrelu_kernel(p_ref, w_ref, shift_ref, o_ref):
    """One (batch, pixel-tile) grid step.

    p_ref:     (tile_pix, K_pad)      bf16 im2col patch block (batch dim squeezed)
    w_ref:     (K_pad, Cout_pad)      bf16 weight, BN scale already folded in
    shift_ref: (1, Cout_pad)          f32 folded BN shift = beta - mean*scale
    o_ref:     (tile_pix, Cout_pad)   bf16 lane-dense output slab
    """
    acc = jnp.dot(p_ref[...], w_ref[...], preferred_element_type=jnp.float32)
    y = acc + shift_ref[...]
    o_ref[...] = jnp.where(y > 0, y, LEAKY_SLOPE * y).astype(o_ref.dtype)


def conv_bn_3d(x_ncdhw, weight_oidhw, gamma, beta, running_mean, running_var,
               *, stride, padding, compute_dtype=jnp.bfloat16):
    """Forward of ConvBn3D.  x_ncdhw: (N, Cin, D, H, W) -> (N, Cout, D', H', W')."""
    n, c_in, d, h, w = x_ncdhw.shape
    c_out = weight_oidhw.shape[0]
    kd, kh, kw = weight_oidhw.shape[2:]
    sd, sh, sw = stride
    pd, ph, pw = padding

    d_out = (d + 2 * pd - kd) // sd + 1
    h_out = (h + 2 * ph - kh) // sh + 1
    w_out = (w + 2 * pw - kw) // sw + 1
    n_pix = d_out * h_out * w_out
    k_total = kd * kh * kw * c_in

    c_out_pad = _round_up(c_out, 128)
    k_pad = _round_up(k_total, 128)
    itemsize = jnp.dtype(compute_dtype).itemsize

    # --- device-derived tiling / VMEM budget ---------------------------------------------
    try:
        vmem_cap = int(pltpu.get_tpu_info().vmem_capacity_bytes)
    except Exception:
        vmem_cap = 64 << 20  # conservative default (v7x per-TensorCore)
    target_pix = 2048 if vmem_cap >= (96 << 20) else 1024   # v5e/v6e vs v7x

    # Balanced pixel tiling, padded to a multiple of 256 (=> bf16 sublane-pack friendly).
    n_balanced = max(1, -(-n_pix // target_pix))
    tile_pix = min(_round_up(-(-n_pix // n_balanced), 256), _round_up(n_pix, 256))

    def _working_set(t):
        return (2 * t * k_pad * itemsize          # patch block, double-buffered
                + 2 * t * c_out_pad * itemsize    # output block, double-buffered
                + t * c_out_pad * 4               # f32 accumulator / epilogue temp
                + 2 * k_pad * c_out_pad * itemsize  # weight (default double-buffer)
                + 4 * c_out_pad * 4)              # shift

    while tile_pix > 256 and _working_set(tile_pix) > vmem_cap // 2:
        tile_pix = max(256, _round_up(tile_pix // 2, 256))

    n_pix_pad = _round_up(n_pix, tile_pix)
    n_pix_tiles = n_pix_pad // tile_pix
    vmem_limit = int(min(max(_working_set(tile_pix) + (2 << 20), 16 << 20),
                         int(0.6 * vmem_cap)))

    # --- wrapper glue: layout, im2col, BN folding (plain XLA, fuses under jit) ------------
    x = jnp.transpose(x_ncdhw, (0, 2, 3, 4, 1)).astype(compute_dtype)    # N,D,H,W,C bf16
    x = jnp.pad(x, ((0, 0), (pd, pd), (ph, ph), (pw, pw), (0, 0)))

    # im2col: patch column order = ((a*kh + b)*kw + c)*Cin + cin — must match w_k rows below.
    taps = []
    for a in range(kd):
        for b in range(kh):
            for c in range(kw):
                taps.append(x[:, a: a + (d_out - 1) * sd + 1: sd,
                                 b: b + (h_out - 1) * sh + 1: sh,
                                 c: c + (w_out - 1) * sw + 1: sw, :])
    patches = jnp.concatenate(taps, axis=-1).reshape(n, n_pix, k_total)
    patches = jnp.pad(patches, ((0, 0), (0, n_pix_pad - n_pix), (0, k_pad - k_total)))

    # Inference BN folding: scale into the weight columns (f32, pre-cast), shift in epilogue.
    scale = (gamma / jnp.sqrt(running_var + BN_EPS)).astype(jnp.float32)           # (Cout,)
    shift = (beta - running_mean * scale).astype(jnp.float32)
    w_k = jnp.transpose(weight_oidhw, (2, 3, 4, 1, 0)).reshape(k_total, c_out)
    w_k = w_k.astype(jnp.float32) * scale[None, :]
    w_k = jnp.pad(w_k, ((0, k_pad - k_total), (0, c_out_pad - c_out))).astype(compute_dtype)
    shift_p = jnp.pad(shift, (0, c_out_pad - c_out)).reshape(1, c_out_pad)

    cost = pl.CostEstimate(
        flops=2 * n * n_pix * k_total * c_out,
        transcendentals=0,
        bytes_accessed=n * n_pix_pad * k_pad * itemsize
        + k_pad * c_out_pad * itemsize
        + n * n_pix_pad * c_out_pad * itemsize)

    out_flat = pl.pallas_call(
        _matmul_bn_lrelu_kernel,
        out_shape=jax.ShapeDtypeStruct((n, n_pix_pad, c_out_pad), compute_dtype),
        grid_spec=pltpu.PrefetchScalarGridSpec(
            num_scalar_prefetch=0,
            grid=(n, n_pix_tiles),
            in_specs=[
                pl.BlockSpec((None, tile_pix, k_pad), lambda i, m: (i, m, 0)),
                pl.BlockSpec((k_pad, c_out_pad), lambda i, m: (0, 0)),
                pl.BlockSpec((1, c_out_pad), lambda i, m: (0, 0)),
            ],
            out_specs=pl.BlockSpec((None, tile_pix, c_out_pad), lambda i, m: (i, m, 0)),
        ),
        compiler_params=pltpu.CompilerParams(
            dimension_semantics=("parallel", "parallel"),
            vmem_limit_bytes=vmem_limit),
        cost_estimate=cost,
    )(patches, w_k, shift_p)

    out = out_flat[:, :n_pix, :c_out].reshape(n, d_out, h_out, w_out, c_out)
    return jnp.transpose(out, (0, 4, 1, 2, 3)).astype(x_ncdhw.dtype)     # back to NCDHW


def _reference(x, weight, gamma, beta, mean, var, *, stride, padding):
    y = lax.conv_general_dilated(
        x, weight, window_strides=stride,
        padding=[(padding[0], padding[0]), (padding[1], padding[1]),
                 (padding[2], padding[2])],
        dimension_numbers=("NCDHW", "OIDHW", "NCDHW"))
    s = (gamma / jnp.sqrt(var + BN_EPS)).reshape(1, -1, 1, 1, 1)
    b = (beta - mean * gamma / jnp.sqrt(var + BN_EPS)).reshape(1, -1, 1, 1, 1)
    y = y * s + b
    return jnp.where(y > 0, y, LEAKY_SLOPE * y)


if __name__ == "__main__":
    key = jax.random.PRNGKey(0)
    k_x, k_w, k_g, k_b, k_m, k_v = jax.random.split(key, 6)

    # Small shapes consistent with the module: N=2, Cin=4, Cout=8, D=H=W=8,
    # kernel_size=3, stride=1, padding=1.
    N, C_IN, C_OUT, D, H, W = 2, 4, 8, 8, 8, 8
    K, STRIDE, PAD = (3, 3, 3), (1, 1, 1), (1, 1, 1)

    x = jax.random.normal(k_x, (N, C_IN, D, H, W), dtype=jnp.float32)
    weight = 0.1 * jax.random.normal(k_w, (C_OUT, C_IN) + K, dtype=jnp.float32)
    gamma = 1.0 + 0.1 * jax.random.normal(k_g, (C_OUT,), dtype=jnp.float32)
    beta = 0.05 * jax.random.normal(k_b, (C_OUT,), dtype=jnp.float32)
    running_mean = 0.1 * jax.random.normal(k_m, (C_OUT,), dtype=jnp.float32)
    running_var = 0.5 + 0.5 * jnp.abs(jax.random.normal(k_v, (C_OUT,), dtype=jnp.float32))

    fwd = jax.jit(functools.partial(conv_bn_3d, stride=STRIDE, padding=PAD))
    out = jax.block_until_ready(fwd(x, weight, gamma, beta, running_mean, running_var))

    ref = _reference(x, weight, gamma, beta, running_mean, running_var,
                     stride=STRIDE, padding=PAD)
    assert out.shape == (N, C_OUT, D, H, W)
    # bf16 matmul operands + bf16 output slab (f32 accumulate) vs pure-f32 reference.
    assert jnp.allclose(out, ref, rtol=2e-2, atol=2e-2), "mismatch vs reference"

    print("KERNEL_OK")
</pallas_src>

<mosaic_0001>
module attributes {stable_mosaic.version = 11 : i64} {
  func.func @_matmul_bn_lrelu_kernel(%arg0: i32, %arg1: i32, %arg2: memref<1x512x128xbf16, #tpu.memory_space<vmem>>, %arg3: memref<128x128xbf16, #tpu.memory_space<vmem>>, %arg4: memref<1x128xf32, #tpu.memory_space<vmem>>, %arg5: memref<1x512x128xbf16, #tpu.memory_space<vmem>>) attributes {dimension_semantics = [#tpu.dimension_semantics<parallel>, #tpu.dimension_semantics<parallel>], iteration_bounds = array<i64: 2, 1>, scalar_prefetch = 0 : i64, scratch_operands = 0 : i64, tpu.core_type = #tpu.core_type<tc>, window_params = [{transform_indices = @transform_0, window_bounds = array<i64: 1, 512, 128>}, {pipeline_mode = #tpu.pipeline_mode<synchronous>, transform_indices = @transform_1, window_bounds = array<i64: 128, 128>}, {pipeline_mode = #tpu.pipeline_mode<synchronous>, transform_indices = @transform_2, window_bounds = array<i64: 1, 128>}, {transform_indices = @transform_3, window_bounds = array<i64: 1, 512, 128>}]} {
    %c0 = arith.constant 0 : index
    %c0_0 = arith.constant 0 : index
    %c0_1 = arith.constant 0 : index
    %0 = vector.load %arg2[%c0, %c0_0, %c0_1] : memref<1x512x128xbf16, #tpu.memory_space<vmem>>, vector<1x512x128xbf16>
    %1 = vector.shape_cast %0 : vector<1x512x128xbf16> to vector<512x128xbf16>
    %c0_2 = arith.constant 0 : index
    %c0_3 = arith.constant 0 : index
    %2 = vector.load %arg3[%c0_2, %c0_3] : memref<128x128xbf16, #tpu.memory_space<vmem>>, vector<128x128xbf16>
    %cst = arith.constant dense<0.000000e+00> : vector<512x128xf32>
    %3 = tpu.matmul %1, %2, %cst {dimension_numbers = #tpu.dot_dimension_numbers<[1], [0], [0], [1], [0, 0, 1, 1], [], []>} : vector<512x128xbf16>, vector<128x128xbf16>, vector<512x128xf32> -> vector<512x128xf32>
    %c0_4 = arith.constant 0 : index
    %c0_5 = arith.constant 0 : index
    %4 = vector.load %arg4[%c0_4, %c0_5] : memref<1x128xf32, #tpu.memory_space<vmem>>, vector<1x128xf32>
    %5 = vector.broadcast %4 : vector<1x128xf32> to vector<512x128xf32>
    %6 = arith.addf %3, %5 : vector<512x128xf32>
    %cst_6 = arith.constant 0.000000e+00 : f32
    %7 = vector.broadcast %cst_6 : f32 to vector<512x128xf32>
    %8 = arith.cmpf ogt, %6, %7 : vector<512x128xf32>
    %cst_7 = arith.constant 0.00999999977 : f32
    %9 = vector.broadcast %cst_7 : f32 to vector<512x128xf32>
    %10 = arith.mulf %9, %6 : vector<512x128xf32>
    %11 = arith.select %8, %6, %10 : vector<512x128xi1>, vector<512x128xf32>
    %12 = arith.truncf %11 : vector<512x128xf32> to vector<512x128xbf16>
    %c0_8 = arith.constant 0 : index
    %c0_9 = arith.constant 0 : index
    %c0_10 = arith.constant 0 : index
    %13 = vector.load %arg5[%c0_8, %c0_9, %c0_10] : memref<1x512x128xbf16, #tpu.memory_space<vmem>>, vector<1x512x128xbf16>
    %14 = vector.shape_cast %13 : vector<1x512x128xbf16> to vector<512x128xbf16>
    %15 = vector.shape_cast %12 : vector<512x128xbf16> to vector<1x512x128xbf16>
    tpu.vector_store %arg5[%c0_8, %c0_9, %c0_10], %15 {strides = array<i32>} : memref<1x512x128xbf16, #tpu.memory_space<vmem>>, vector<1x512x128xbf16>,
    return
  }
  func.func @transform_0(%arg0: i32, %arg1: i32) -> (i32, i32, i32) {
    %c0_i32 = arith.constant 0 : i32
    %c0_i32_0 = arith.constant 0 : i32
    return %arg0, %arg1, %c0_i32 : i32, i32, i32
  }
  func.func @transform_1(%arg0: i32, %arg1: i32) -> (i32, i32) {
    %c0_i32 = arith.constant 0 : i32
    %c0_i32_0 = arith.constant 0 : i32
    %c0_i32_1 = arith.constant 0 : i32
    return %c0_i32, %c0_i32_0 : i32, i32
  }
  func.func @transform_2(%arg0: i32, %arg1: i32) -> (i32, i32) {
    %c0_i32 = arith.constant 0 : i32
    %c0_i32_0 = arith.constant 0 : i32
    %c0_i32_1 = arith.constant 0 : i32
    return %c0_i32, %c0_i32_0 : i32, i32
  }
  func.func @transform_3(%arg0: i32, %arg1: i32) -> (i32, i32, i32) {
    %c0_i32 = arith.constant 0 : i32
    %c0_i32_0 = arith.constant 0 : i32
    return %arg0, %arg1, %c0_i32 : i32, i32, i32
  }
}

</mosaic_0001>

<bundles_post_ra>
// kernel: conv_bn_3d.1
= control target key start
LH: loop header
LB: loop body
LE: loop exit
PB: predicated region body
PF: predicated region fallthrough
CT: control target
= control target key end

     0   :  { %s2043_s12 = smov 0   ;;  %s2045_s13 = smov 0   ;;  %s2247_s0 = inlined_call_operand.vmem [shape: bf16[2,512,128], index: 0, kind: input, shape index: {}]   ;;  %s2248_s1 = inlined_call_operand.vmem [shape: bf16[128,128], index: 1, kind: input, shape index: {}]   ;;  %s2249_s2 = inlined_call_operand.vmem [shape: f32[1,128], index: 2, kind: input, shape index: {}]   ;;  %s2250_s3 = inlined_call_operand.vmem [shape: bf16[2,512,128], index: 3, kind: output, shape index: {}]  }
   0x1   :  { %s2047_s14 = smov 0  }
   0x2 LB: > { %s25_s15 = sadd.s32 1, %s2017_s13  ;;  %p1430_p0 = scmp.ge.s32.totalorder %s2021_s14, 1  ;;  %s2021_s14 = sphi %s2047_s14, %s13_s14   ;;  %s2017_s13 = sphi %s2045_s13, %s2252_s13   ;;  %s2013_s12 = sphi %s2043_s12, %s2251_s12  }
   0x3   : > { %p27_p1 = scmp.ge.s32.totalorder %s25_s15, 2  ;;  %p158_p2 = scmp.lt.s32.totalorder %s2021_s14, 3 }
   0x5   : > { %s2254_s15 = smov (%p27_p1, %s25_s15), 0  ;;  %p159_p3 = pnand %p1430_p0, %p158_p2 }
   0x6   : > { %p191_p4 = scmp.lt.s32.totalorder (!%p159_p3), %s2013_s12, 1 }
   0x7   : > { %162 = sbr.rel (%p159_p3) target bundleno = 315 (0x13b), region = 32 }
   0xc   : > { %v1959_v0 = vld [vmem:[%s2248_s1 + $0x38] sm:$0xff]   ;;  %v1960_v1 = vld [vmem:[%s2248_s1 + $0x30] sm:$0xff]   ;;  %s2256_s12 = smov (!%p191_p4, %s2013_s12), 1  ;;  %v1961_v2 = vld [vmem:[%s2248_s1 + $0x28] sm:$0xff]  }
   0xd   : > { %1839 = vmatprep.subr.bf16.mxu0 %v1959_v0  ;;  %1919 = vmatprep.subr.bf16.mxu1 %v1959_v0  ;;  %s1542_s22 = sshll.u32 %s2256_s12, 8  ;;  %v1962_v3 = vld [vmem:[%s2248_s1 + $0x20] sm:$0xff]   ;;  %v1963_v6 = vld [vmem:[%s2248_s1 + $0x18] sm:$0xff]   ;;  %v1964_v7 = vld [vmem:[%s2248_s1 + $0x10] sm:$0xff]  }
   0xe   : > { %1840 = vmatpush3.bf16.msra.mxu0 %v1959_v0  ;;  %1927 = vmatpush3.bf16.msra.mxu1 %v1959_v0  ;;  %s2078_s25 = scalar_lea.vmem %s2247_s0, %s1542_s22  ;;  %v1965_v8 = vld [vmem:[%s2248_s1 + $0x8] sm:$0xff]   ;;  %v1966_v9 = vld [vmem:[%s2248_s1] sm:$0xff]   ;;  %s2145_s17 = scalar_lea.vmem %s2250_s3, %s1542_s22 }
   0xf   : > { %1841 = vmatprep.subr.bf16.mxu0 %v1960_v1  ;;  %1920 = vmatprep.subr.bf16.mxu1 %v1960_v1  ;;  %v1967_v4 = vld [vmem:[%s2078_s25] sm:$0xff]   ;;  %v1969_v10 = vld [vmem:[%s2078_s25 + $0x8] sm:$0xff]   ;;  %v1971_v12 = vld [vmem:[%s2078_s25 + $0x10] sm:$0xff]  }
  0x10   : > { %v1968_v5 = vld [vmem:[%s2078_s25 + $0x80] sm:$0xff]   ;;  %1855 = vmatprep.mubr.bf16.mxu0 %v1967_v4  ;;  %v1970_v11 = vld [vmem:[%s2078_s25 + $0x88] sm:$0xff]   ;;  %v1972_v13 = vld [vmem:[%s2078_s25 + $0x90] sm:$0xff]  }
  0x11   : > { %1887 = vmatprep.mubr.bf16.mxu1 %v1968_v5  ;;  %v1973_v14 = vld [vmem:[%s2078_s25 + $0x18] sm:$0xff]   ;;  %v1975_v16 = vld [vmem:[%s2078_s25 + $0x20] sm:$0xff]   ;;  %v1977_v18 = vld [vmem:[%s2078_s25 + $0x28] sm:$0xff]  }
  0x12   : > { %1842 = vmatpush3.bf16.msra.mxu0 %v1960_v1  ;;  %1928 = vmatpush3.bf16.msra.mxu1 %v1960_v1  ;;  %v1974_v15 = vld [vmem:[%s2078_s25 + $0x98] sm:$0xff]   ;;  %v1976_v17 = vld [vmem:[%s2078_s25 + $0xa0] sm:$0xff]   ;;  %v1978_v19 = vld [vmem:[%s2078_s25 + $0xa8] sm:$0xff]  }
  0x13   : > { %1843 = vmatprep.subr.bf16.mxu0 %v1961_v2  ;;  %1921 = vmatprep.subr.bf16.mxu1 %v1961_v2  ;;  %v1979_v20 = vld [vmem:[%s2078_s25 + $0x30] sm:$0xff]   ;;  %v1981_v22 = vld [vmem:[%s2078_s25 + $0x38] sm:$0xff]   ;;  %v1983_v24 = vld [vmem:[%s2078_s25 + $0x40] sm:$0xff]  }
  0x14   : > { %v1980_v21 = vld [vmem:[%s2078_s25 + $0xb0] sm:$0xff]   ;;  %v1982_v23 = vld [vmem:[%s2078_s25 + $0xb8] sm:$0xff]   ;;  %v1984_v25 = vld [vmem:[%s2078_s25 + $0xc0] sm:$0xff]  }
  0x15   : > { %v1985_v26 = vld [vmem:[%s2078_s25 + $0x48] sm:$0xff]   ;;  %v1987_v28 = vld [vmem:[%s2078_s25 + $0x50] sm:$0xff]   ;;  %v1989_v30 = vld [vmem:[%s2078_s25 + $0x58] sm:$0xff]  }
  0x16   : > { %1844 = vmatpush3.bf16.msra.mxu0 %v1961_v2  ;;  %1929 = vmatpush3.bf16.msra.mxu1 %v1961_v2  ;;  %v1986_v27 = vld [vmem:[%s2078_s25 + $0xc8] sm:$0xff]   ;;  %v1988_v29 = vld [vmem:[%s2078_s25 + $0xd0] sm:$0xff]   ;;  %v1990_v31 = vld [vmem:[%s2078_s25 + $0xd8] sm:$0xff]  }
  0x17   : > { %1845 = vmatprep.subr.bf16.mxu0 %v1962_v3  ;;  %1922 = vmatprep.subr.bf16.mxu1 %v1962_v3  ;;  %v1991_v32 = vld [vmem:[%s2078_s25 + $0x60] sm:$0xff]   ;;  %v1993_v34 = vld [vmem:[%s2078_s25 + $0x68] sm:$0xff]   ;;  %v1995_v36 = vld [vmem:[%s2078_s25 + $0x70] sm:$0xff]  }
  0x18   : > { %v1992_v33 = vld [vmem:[%s2078_s25 + $0xe0] sm:$0xff]   ;;  %v1994_v35 = vld [vmem:[%s2078_s25 + $0xe8] sm:$0xff]   ;;  %v1996_v37 = vld [vmem:[%s2078_s25 + $0xf0] sm:$0xff]  }
  0x19   : > { %v1997_v38 = vld [vmem:[%s2078_s25 + $0x78] sm:$0xff]   ;;  %v2130_v40 = vld [vmem:[%s2249_s2] ss:$0 sm:$0xff] }
  0x1a   : > { %1846 = vmatpush3.bf16.msra.mxu0 %v1962_v3  ;;  %1930 = vmatpush3.bf16.msra.mxu1 %v1962_v3  ;;  %v1998_v39 = vld [vmem:[%s2078_s25 + $0xf8] sm:$0xff]  }
  0x1b   : > { %1847 = vmatprep.subr.bf16.mxu0 %v1963_v6  ;;  %1923 = vmatprep.subr.bf16.mxu1 %v1963_v6 }
  0x1e   : > { %1848 = vmatpush3.bf16.msra.mxu0 %v1963_v6  ;;  %1931 = vmatpush3.bf16.msra.mxu1 %v1963_v6 }
  0x1f   : > { %1849 = vmatprep.subr.bf16.mxu0 %v1964_v7  ;;  %1924 = vmatprep.subr.bf16.mxu1 %v1964_v7 }
  0x22   : > { %1850 = vmatpush3.bf16.msra.mxu0 %v1964_v7  ;;  %1932 = vmatpush3.bf16.msra.mxu1 %v1964_v7 }
  0x23   : > { %1851 = vmatprep.subr.bf16.mxu0 %v1965_v8  ;;  %1925 = vmatprep.subr.bf16.mxu1 %v1965_v8 }
  0x26   : > { %1852 = vmatpush3.bf16.msra.mxu0 %v1965_v8  ;;  %1933 = vmatpush3.bf16.msra.mxu1 %v1965_v8 }
  0x27   : > { %1853 = vmatprep.subr.bf16.mxu0 %v1966_v9  ;;  %1926 = vmatprep.subr.bf16.mxu1 %v1966_v9 }
  0x2a   : > { %1854 = vmatpush3.bf16.msra.mxu0 %v1966_v9  ;;  %1934 = vmatpush3.bf16.msra.mxu1 %v1966_v9 }
  0x2d   : > { %1856 = vmatmul.mubr.bf16.vlgmr.msra.gmra.mxu0 %v1969_v10  ;;  %1888 = vmatmul.mubr.bf16.vlgmr.msra.gmra.mxu1 %v1970_v11 }
  0x2e   : > { %1859 = vmatprep.mubr.bf16.mxu0 %v1971_v12  ;;  %1891 = vmatprep.mubr.bf16.mxu1 %v1972_v13 }
  0x35   : > { %1860 = vmatmul.mubr.bf16.gmra.mxu0 %v1973_v14  ;;  %1892 = vmatmul.mubr.bf16.gmra.mxu1 %v1974_v15 }
  0x36   : > { %1863 = vmatprep.mubr.bf16.mxu0 %v1975_v16  ;;  %1895 = vmatprep.mubr.bf16.mxu1 %v1976_v17 }
  0x3d   : > { %1864 = vmatmul.mubr.bf16.gmra.mxu0 %v1977_v18  ;;  %1896 = vmatmul.mubr.bf16.gmra.mxu1 %v1978_v19 }
  0x3e   : > { %1867 = vmatprep.mubr.bf16.mxu0 %v1979_v20  ;;  %1899 = vmatprep.mubr.bf16.mxu1 %v1980_v21 }
  0x45   : > { %1868 = vmatmul.mubr.bf16.gmra.mxu0 %v1981_v22  ;;  %1900 = vmatmul.mubr.bf16.gmra.mxu1 %v1982_v23 }
  0x46   : > { %1871 = vmatprep.mubr.bf16.mxu0 %v1983_v24  ;;  %1903 = vmatprep.mubr.bf16.mxu1 %v1984_v25 }
  0x4d   : > { %1872 = vmatmul.mubr.bf16.gmra.mxu0 %v1985_v26  ;;  %1904 = vmatmul.mubr.bf16.gmra.mxu1 %v1986_v27 }
  0x4e   : > { %1875 = vmatprep.mubr.bf16.mxu0 %v1987_v28  ;;  %1907 = vmatprep.mubr.bf16.mxu1 %v1988_v29 }
  0x55   : > { %1876 = vmatmul.mubr.bf16.gmra.mxu0 %v1989_v30  ;;  %1908 = vmatmul.mubr.bf16.gmra.mxu1 %v1990_v31 }
  0x56   : > { %1879 = vmatprep.mubr.bf16.mxu0 %v1991_v32  ;;  %1911 = vmatprep.mubr.bf16.mxu1 %v1992_v33 }
  0x5d   : > { %1880 = vmatmul.mubr.bf16.gmra.mxu0 %v1993_v34  ;;  %1912 = vmatmul.mubr.bf16.gmra.mxu1 %v1994_v35 }
  0x5e   : > { %1883 = vmatprep.mubr.bf16.mxu0 %v1995_v36  ;;  %1915 = vmatprep.mubr.bf16.mxu1 %v1996_v37 }
  0x65   : > { %1884 = vmatmul.mubr.bf16.gmra.mxu0 %v1997_v38  ;;  %1916 = vmatmul.mubr.bf16.gmra.mxu1 %v1998_v39 }
  0xed   : > { %v1857_v41 = vpop.f32.mrf.mxu0  ;;  %v1889_v42 = vpop.f32.mrf.mxu1 }
  0xee   : > { %v581_v43 = vadd.f32 %v1857_v41, %v2130_v40  ;;  %v709_v44 = vadd.f32 %v1889_v42, %v2130_v40 }
  0xef   : > { %v572_v45 = vpop.f32.mrf.mxu0  ;;  %v700_v46 = vpop.f32.mrf.mxu1 }
  0xf0   : > { %vm829_vm0 = vcmp.gt.f32.partialorder %v581_v43, 0.0  ;;  %v893_v47 = vmul.f32 0.01, %v581_v43  ;;  %vm861_vm1 = vcmp.gt.f32.partialorder %v709_v44, 0.0  ;;  %v925_v48 = vmul.f32 0.01, %v709_v44 }
  0xf1   : > { %v573_v49 = vadd.f32 %v2130_v40, %v572_v45  ;;  %v701_v50 = vadd.f32 %v2130_v40, %v700_v46  ;;  %v1858_v51 = vpop.f32.mrf.mxu0  ;;  %v1890_v52 = vpop.f32.mrf.mxu1 }
  0xf2   : > { %v957_v53 = vsel %vm829_vm0, %v581_v43, %v893_v47  ;;  %v584_v54 = vadd.f32 %v1858_v51, %v2130_v40  ;;  %v712_v55 = vadd.f32 %v1890_v52, %v2130_v40  ;;  %v989_v56 = vsel %vm861_vm1, %v709_v44, %v925_v48 }
  0xf3   : > { %vm827_vm2 = vcmp.gt.f32.partialorder %v573_v49, 0.0  ;;  %v891_v57 = vmul.f32 0.01, %v573_v49  ;;  %vm859_vm3 = vcmp.gt.f32.partialorder %v701_v50, 0.0  ;;  %v575_v58 = vpop.f32.mrf.mxu0  ;;  %v703_v59 = vpop.f32.mrf.mxu1  ;;  %v923_v63 = vmul.f32 0.01, %v701_v50 }
  0xf4   : > { %vm830_vm4 = vcmp.gt.f32.partialorder %v584_v54, 0.0  ;;  %v894_v60 = vmul.f32 0.01, %v584_v54  ;;  %vm862_vm5 = vcmp.gt.f32.partialorder %v712_v55, 0.0  ;;  %v926_v61 = vmul.f32 0.01, %v712_v55 }
  0xf5   : > { %v955_v62 = vsel %vm827_vm2, %v573_v49, %v891_v57  ;;  %v576_v0 = vadd.f32 %v2130_v40, %v575_v58  ;;  %v704_v1 = vadd.f32 %v2130_v40, %v703_v59  ;;  %v1861_v2 = vpop.f32.mrf.mxu0  ;;  %v1893_v3 = vpop.f32.mrf.mxu1  ;;  %v987_v15 = vsel %vm859_vm3, %v701_v50, %v923_v63 }
  0xf6   : > { %v958_v4 = vsel %vm830_vm4, %v584_v54, %v894_v60  ;;  %v990_v5 = vsel %vm862_vm5, %v712_v55, %v926_v61  ;;  %v597_v6 = vadd.f32 %v1861_v2, %v2130_v40  ;;  %v725_v7 = vadd.f32 %v1893_v3, %v2130_v40 }
  0xf7   : > { %v1616_v8 = vpack.c.bf16 %v958_v4, %v957_v53  ;;  %v1696_v9 = vpack.c.bf16 %v990_v5, %v989_v56  ;;  %vm828_vm6 = vcmp.gt.f32.partialorder %v576_v0, 0.0  ;;  %v892_v10 = vmul.f32 0.01, %v576_v0  ;;  %v588_v11 = vpop.f32.mrf.mxu0  ;;  %v716_v12 = vpop.f32.mrf.mxu1 }
  0xf8   : > { %vm860_vm7 = vcmp.gt.f32.partialorder %v704_v1, 0.0  ;;  %v924_v13 = vmul.f32 0.01, %v704_v1  ;;  %vm833_vm8 = vcmp.gt.f32.partialorder %v597_v6, 0.0  ;;  %v897_v14 = vmul.f32 0.01, %v597_v6 }
  0xf9   : > { %1768 = vst [vmem:[%s2145_s17 + $0x8] sm:$0xff] %v1616_v8   ;;  %1784 = vst [vmem:[%s2145_s17 + $0x88] sm:$0xff] %v1696_v9   ;;  %v956_v16 = vsel %vm828_vm6, %v576_v0, %v892_v10  ;;  %v929_v17 = vmul.f32 0.01, %v725_v7  ;;  %v589_v18 = vadd.f32 %v2130_v40, %v588_v11  ;;  %v1862_v19 = vpop.f32.mrf.mxu0  ;;  %v1894_v20 = vpop.f32.mrf.mxu1  ;;  %vm865_vm9 = vcmp.gt.f32.partialorder %v725_v7, 0.0 }
  0xfa   : > { %v1611_v21 = vpack.c.bf16 %v956_v16, %v955_v62  ;;  %v988_v22 = vsel %vm860_vm7, %v704_v1, %v924_v13  ;;  %v717_v23 = vadd.f32 %v2130_v40, %v716_v12  ;;  %v961_v25 = vsel %vm833_vm8, %v597_v6, %v897_v14 }
  0xfb   : > { %v1691_v24 = vpack.c.bf16 %v988_v22, %v987_v15  ;;  %vm831_vm10 = vcmp.gt.f32.partialorder %v589_v18, 0.0  ;;  %v895_v26 = vmul.f32 0.01, %v589_v18  ;;  %v591_v27 = vpop.f32.mrf.mxu0  ;;  %v719_v28 = vpop.f32.mrf.mxu1  ;;  %v600_v30 = vadd.f32 %v1862_v19, %v2130_v40 }
  0xfc   : > { %1612 = vst [vmem:[%s2145_s17] sm:$0xff] %v1611_v21   ;;  %vm863_vm11 = vcmp.gt.f32.partialorder %v717_v23, 0.0  ;;  %v927_v29 = vmul.f32 0.01, %v717_v23  ;;  %v728_v31 = vadd.f32 %v1894_v20, %v2130_v40  ;;  %v993_v32 = vsel %vm865_vm9, %v725_v7, %v929_v17 }
  0xfd   : > { %1783 = vst [vmem:[%s2145_s17 + $0x80] sm:$0xff] %v1691_v24   ;;  %v959_v33 = vsel %vm831_vm10, %v589_v18, %v895_v26  ;;  %v592_v34 = vadd.f32 %v2130_v40, %v591_v27  ;;  %v720_v35 = vadd.f32 %v2130_v40, %v719_v28  ;;  %v1865_v36 = vpop.f32.mrf.mxu0  ;;  %v1897_v37 = vpop.f32.mrf.mxu1  ;;  %vm834_vm12 = vcmp.gt.f32.partialorder %v600_v30, 0.0 }
  0xfe   : > { %v991_v38 = vsel %vm863_vm11, %v717_v23, %v927_v29  ;;  %v898_v39 = vmul.f32 0.01, %v600_v30  ;;  %vm866_vm13 = vcmp.gt.f32.partialorder %v728_v31, 0.0  ;;  %v930_v41 = vmul.f32 0.01, %v728_v31 }
  0xff   : > { %vm832_vm14 = vcmp.gt.f32.partialorder %v592_v34, 0.0  ;;  %v896_v42 = vmul.f32 0.01, %v592_v34  ;;  %vm864_vm15 = vcmp.gt.f32.partialorder %v720_v35, 0.0  ;;  %v604_v43 = vpop.f32.mrf.mxu0  ;;  %v732_v44 = vpop.f32.mrf.mxu1  ;;  %v928_v46 = vmul.f32 0.01, %v720_v35 }
 0x100   : > { %v962_v45 = vsel %vm834_vm12, %v600_v30, %v898_v39  ;;  %v613_v47 = vadd.f32 %v1865_v36, %v2130_v40  ;;  %v741_v48 = vadd.f32 %v1897_v37, %v2130_v40  ;;  %v994_v50 = vsel %vm866_vm13, %v728_v31, %v930_v41 }
 0x101   : > { %v1626_v49 = vpack.c.bf16 %v962_v45, %v961_v25  ;;  %v960_v51 = vsel %vm832_vm14, %v592_v34, %v896_v42  ;;  %v605_v52 = vadd.f32 %v2130_v40, %v604_v43  ;;  %v1866_v53 = vpop.f32.mrf.mxu0  ;;  %v1898_v54 = vpop.f32.mrf.mxu1  ;;  %v1706_v55 = vpack.c.bf16 %v994_v50, %v993_v32 }
 0x102   : > { %v1621_v56 = vpack.c.bf16 %v960_v51, %v959_v33  ;;  %v992_v57 = vsel %vm864_vm15, %v720_v35, %v928_v46  ;;  %vm837_vm0 = vcmp.gt.f32.partialorder %v613_v47, 0.0  ;;  %v901_v59 = vmul.f32 0.01, %v613_v47 }
 0x103   : > { %1770 = vst [vmem:[%s2145_s17 + $0x18] sm:$0xff] %v1626_v49   ;;  %v1701_v58 = vpack.c.bf16 %v992_v57, %v991_v38  ;;  %vm869_vm1 = vcmp.gt.f32.partialorder %v741_v48, 0.0  ;;  %v933_v60 = vmul.f32 0.01, %v741_v48  ;;  %v607_v61 = vpop.f32.mrf.mxu0  ;;  %v735_v62 = vpop.f32.mrf.mxu1  ;;  %1786 = vst [vmem:[%s2145_s17 + $0x98] sm:$0xff] %v1706_v55   ;;  %vm835_vm2 = vcmp.gt.f32.partialorder %v605_v52, 0.0 }
 0x104   : > { %1769 = vst [vmem:[%s2145_s17 + $0x10] sm:$0xff] %v1621_v56   ;;  %v899_v63 = vmul.f32 0.01, %v605_v52  ;;  %v733_v0 = vadd.f32 %v2130_v40, %v732_v44  ;;  %v616_v1 = vadd.f32 %v1866_v53, %v2130_v40  ;;  %v965_v2 = vsel %vm837_vm0, %v613_v47, %v901_v59 }
 0x105   : > { %1785 = vst [vmem:[%s2145_s17 + $0x90] sm:$0xff] %v1701_v58   ;;  %v997_v3 = vsel %vm869_vm1, %v741_v48, %v933_v60  ;;  %v744_v4 = vadd.f32 %v1898_v54, %v2130_v40  ;;  %v608_v5 = vadd.f32 %v2130_v40, %v607_v61  ;;  %v1869_v6 = vpop.f32.mrf.mxu0  ;;  %v1901_v7 = vpop.f32.mrf.mxu1  ;;  %v736_v16 = vadd.f32 %v2130_v40, %v735_v62 }
 0x106   : > { %v963_v8 = vsel %vm835_vm2, %v605_v52, %v899_v63  ;;  %vm867_vm3 = vcmp.gt.f32.partialorder %v733_v0, 0.0  ;;  %v931_v9 = vmul.f32 0.01, %v733_v0  ;;  %vm838_vm4 = vcmp.gt.f32.partialorder %v616_v1, 0.0 }
 0x107   : > { %v902_v10 = vmul.f32 0.01, %v616_v1  ;;  %vm870_vm5 = vcmp.gt.f32.partialorder %v744_v4, 0.0  ;;  %v934_v11 = vmul.f32 0.01, %v744_v4  ;;  %vm836_vm6 = vcmp.gt.f32.partialorder %v608_v5, 0.0  ;;  %v620_v12 = vpop.f32.mrf.mxu0  ;;  %v748_v13 = vpop.f32.mrf.mxu1 }
 0x108   : > { %v995_v14 = vsel %vm867_vm3, %v733_v0, %v931_v9  ;;  %v900_v15 = vmul.f32 0.01, %v608_v5  ;;  %v629_v17 = vadd.f32 %v1869_v6, %v2130_v40  ;;  %v757_v20 = vadd.f32 %v1901_v7, %v2130_v40 }
 0x109   : > { %v966_v18 = vsel %vm838_vm4, %v616_v1, %v902_v10  ;;  %v998_v19 = vsel %vm870_vm5, %v744_v4, %v934_v11  ;;  %v621_v21 = vadd.f32 %v2130_v40, %v620_v12  ;;  %v1870_v22 = vpop.f32.mrf.mxu0  ;;  %v1902_v23 = vpop.f32.mrf.mxu1  ;;  %vm868_vm7 = vcmp.gt.f32.partialorder %v736_v16, 0.0 }
 0x10a   : > { %v1636_v24 = vpack.c.bf16 %v966_v18, %v965_v2  ;;  %v1716_v25 = vpack.c.bf16 %v998_v19, %v997_v3  ;;  %v964_v26 = vsel %vm836_vm6, %v608_v5, %v900_v15  ;;  %v932_v28 = vmul.f32 0.01, %v736_v16 }
 0x10b   : > { %v1631_v27 = vpack.c.bf16 %v964_v26, %v963_v8  ;;  %vm841_vm8 = vcmp.gt.f32.partialorder %v629_v17, 0.0  ;;  %v905_v29 = vmul.f32 0.01, %v629_v17  ;;  %v623_v30 = vpop.f32.mrf.mxu0  ;;  %v751_v31 = vpop.f32.mrf.mxu1  ;;  %vm873_vm9 = vcmp.gt.f32.partialorder %v757_v20, 0.0 }
 0x10c   : > { %1772 = vst [vmem:[%s2145_s17 + $0x28] sm:$0xff] %v1636_v24   ;;  %1788 = vst [vmem:[%s2145_s17 + $0xa8] sm:$0xff] %v1716_v25   ;;  %v937_v32 = vmul.f32 0.01, %v757_v20  ;;  %vm839_vm10 = vcmp.gt.f32.partialorder %v621_v21, 0.0  ;;  %v996_v34 = vsel %vm868_vm7, %v736_v16, %v932_v28  ;;  %v749_v36 = vadd.f32 %v2130_v40, %v748_v13 }
 0x10d   : > { %v903_v33 = vmul.f32 0.01, %v621_v21  ;;  %1771 = vst [vmem:[%s2145_s17 + $0x20] sm:$0xff] %v1631_v27   ;;  %v969_v35 = vsel %vm841_vm8, %v629_v17, %v905_v29  ;;  %v632_v37 = vadd.f32 %v1870_v22, %v2130_v40  ;;  %v1873_v38 = vpop.f32.mrf.mxu0  ;;  %v1905_v39 = vpop.f32.mrf.mxu1  ;;  %v1711_v41 = vpack.c.bf16 %v996_v34, %v995_v14 }
 0x10e   : > { %v1001_v42 = vsel %vm873_vm9, %v757_v20, %v937_v32  ;;  %v760_v44 = vadd.f32 %v1902_v23, %v2130_v40  ;;  %vm871_vm11 = vcmp.gt.f32.partialorder %v749_v36, 0.0  ;;  %v935_v45 = vmul.f32 0.01, %v749_v36 }
 0x10f   : > { %v967_v43 = vsel %vm839_vm10, %v621_v21, %v903_v33  ;;  %vm842_vm12 = vcmp.gt.f32.partialorder %v632_v37, 0.0  ;;  %v906_v46 = vmul.f32 0.01, %v632_v37  ;;  %v636_v47 = vpop.f32.mrf.mxu0  ;;  %v764_v48 = vpop.f32.mrf.mxu1  ;;  %1787 = vst [vmem:[%s2145_s17 + $0xa0] sm:$0xff] %v1711_v41   ;;  %v624_v50 = vadd.f32 %v2130_v40, %v623_v30 }
 0x110   : > { %vm874_vm13 = vcmp.gt.f32.partialorder %v760_v44, 0.0  ;;  %v938_v49 = vmul.f32 0.01, %v760_v44  ;;  %v752_v51 = vadd.f32 %v2130_v40, %v751_v31  ;;  %v999_v52 = vsel %vm871_vm11, %v749_v36, %v935_v45 }
 0x111   : > { %v970_v53 = vsel %vm842_vm12, %v632_v37, %v906_v46  ;;  %v645_v54 = vadd.f32 %v1873_v38, %v2130_v40  ;;  %v773_v55 = vadd.f32 %v1905_v39, %v2130_v40  ;;  %v1874_v56 = vpop.f32.mrf.mxu0  ;;  %v1906_v57 = vpop.f32.mrf.mxu1  ;;  %vm840_vm14 = vcmp.gt.f32.partialorder %v624_v50, 0.0 }
 0x112   : > { %v1646_v58 = vpack.c.bf16 %v970_v53, %v969_v35  ;;  %v1002_v59 = vsel %vm874_vm13, %v760_v44, %v938_v49  ;;  %v904_v60 = vmul.f32 0.01, %v624_v50  ;;  %vm872_vm15 = vcmp.gt.f32.partialorder %v752_v51, 0.0 }
 0x113   : > { %v1726_v61 = vpack.c.bf16 %v1002_v59, %v1001_v42  ;;  %v936_v62 = vmul.f32 0.01, %v752_v51  ;;  %vm845_vm0 = vcmp.gt.f32.partialorder %v645_v54, 0.0  ;;  %v639_v63 = vpop.f32.mrf.mxu0  ;;  %v767_v0 = vpop.f32.mrf.mxu1  ;;  %v909_v2 = vmul.f32 0.01, %v645_v54 }
 0x114   : > { %1774 = vst [vmem:[%s2145_s17 + $0x38] sm:$0xff] %v1646_v58   ;;  %v968_v1 = vsel %vm840_vm14, %v624_v50, %v904_v60  ;;  %vm877_vm1 = vcmp.gt.f32.partialorder %v773_v55, 0.0  ;;  %v941_v3 = vmul.f32 0.01, %v773_v55  ;;  %v637_v6 = vadd.f32 %v2130_v40, %v636_v47 }
 0x115   : > { %1790 = vst [vmem:[%s2145_s17 + $0xb8] sm:$0xff] %v1726_v61   ;;  %v1641_v4 = vpack.c.bf16 %v968_v1, %v967_v43  ;;  %v1000_v5 = vsel %vm872_vm15, %v752_v51, %v936_v62  ;;  %v765_v7 = vadd.f32 %v2130_v40, %v764_v48  ;;  %v1877_v8 = vpop.f32.mrf.mxu0  ;;  %v1909_v9 = vpop.f32.mrf.mxu1  ;;  %v973_v11 = vsel %vm845_vm0, %v645_v54, %v909_v2 }
 0x116   : > { %v1721_v10 = vpack.c.bf16 %v1000_v5, %v999_v52  ;;  %v1005_v12 = vsel %vm877_vm1, %v773_v55, %v941_v3  ;;  %v648_v13 = vadd.f32 %v1874_v56, %v2130_v40  ;;  %vm843_vm2 = vcmp.gt.f32.partialorder %v637_v6, 0.0 }
 0x117   : > { %1773 = vst [vmem:[%s2145_s17 + $0x30] sm:$0xff] %v1641_v4   ;;  %v907_v14 = vmul.f32 0.01, %v637_v6  ;;  %vm875_vm3 = vcmp.gt.f32.partialorder %v765_v7, 0.0  ;;  %v939_v15 = vmul.f32 0.01, %v765_v7  ;;  %v652_v16 = vpop.f32.mrf.mxu0  ;;  %v780_v17 = vpop.f32.mrf.mxu1  ;;  %v776_v19 = vadd.f32 %v1906_v57, %v2130_v40 }
 0x118   : > { %1789 = vst [vmem:[%s2145_s17 + $0xb0] sm:$0xff] %v1721_v10   ;;  %vm846_vm4 = vcmp.gt.f32.partialorder %v648_v13, 0.0  ;;  %v910_v18 = vmul.f32 0.01, %v648_v13  ;;  %v640_v20 = vadd.f32 %v2130_v40, %v639_v63  ;;  %v768_v23 = vadd.f32 %v2130_v40, %v767_v0 }
 0x119   : > { %v971_v21 = vsel %vm843_vm2, %v637_v6, %v907_v14  ;;  %v1003_v22 = vsel %vm875_vm3, %v765_v7, %v939_v15  ;;  %v661_v24 = vadd.f32 %v1877_v8, %v2130_v40  ;;  %v1878_v25 = vpop.f32.mrf.mxu0  ;;  %v1910_v26 = vpop.f32.mrf.mxu1  ;;  %vm878_vm5 = vcmp.gt.f32.partialorder %v776_v19, 0.0 }
 0x11a   : > { %v974_v27 = vsel %vm846_vm4, %v648_v13, %v910_v18  ;;  %v942_v28 = vmul.f32 0.01, %v776_v19  ;;  %vm844_vm6 = vcmp.gt.f32.partialorder %v640_v20, 0.0  ;;  %v908_v30 = vmul.f32 0.01, %v640_v20 }
 0x11b   : > { %v1656_v29 = vpack.c.bf16 %v974_v27, %v973_v11  ;;  %vm876_vm7 = vcmp.gt.f32.partialorder %v768_v23, 0.0  ;;  %v940_v31 = vmul.f32 0.01, %v768_v23  ;;  %v655_v32 = vpop.f32.mrf.mxu0  ;;  %v783_v33 = vpop.f32.mrf.mxu1  ;;  %vm849_vm8 = vcmp.gt.f32.partialorder %v661_v24, 0.0 }
 0x11c   : > { %v1006_v34 = vsel %vm878_vm5, %v776_v19, %v942_v28  ;;  %v913_v35 = vmul.f32 0.01, %v661_v24  ;;  %v789_v36 = vadd.f32 %v1909_v9, %v2130_v40  ;;  %v972_v38 = vsel %vm844_vm6, %v640_v20, %v908_v30 }
 0x11d   : > { %1776 = vst [vmem:[%s2145_s17 + $0x48] sm:$0xff] %v1656_v29   ;;  %v1736_v37 = vpack.c.bf16 %v1006_v34, %v1005_v12  ;;  %v1004_v39 = vsel %vm876_vm7, %v768_v23, %v940_v31  ;;  %v653_v41 = vadd.f32 %v2130_v40, %v652_v16  ;;  %v1881_v42 = vpop.f32.mrf.mxu0  ;;  %v1913_v43 = vpop.f32.mrf.mxu1  ;;  %v1651_v44 = vpack.c.bf16 %v972_v38, %v971_v21 }
 0x11e   : > { %v1731_v45 = vpack.c.bf16 %v1004_v39, %v1003_v22  ;;  %v977_v46 = vsel %vm849_vm8, %v661_v24, %v913_v35  ;;  %vm881_vm9 = vcmp.gt.f32.partialorder %v789_v36, 0.0  ;;  %v945_v47 = vmul.f32 0.01, %v789_v36 }
 0x11f   : > { %1792 = vst [vmem:[%s2145_s17 + $0xc8] sm:$0xff] %v1736_v37   ;;  %vm847_vm10 = vcmp.gt.f32.partialorder %v653_v41, 0.0  ;;  %v911_v48 = vmul.f32 0.01, %v653_v41  ;;  %v781_v49 = vadd.f32 %v2130_v40, %v780_v17  ;;  %v668_v50 = vpop.f32.mrf.mxu0  ;;  %v796_v51 = vpop.f32.mrf.mxu1  ;;  %1775 = vst [vmem:[%s2145_s17 + $0x40] sm:$0xff] %v1651_v44   ;;  %v664_v52 = vadd.f32 %v1878_v25, %v2130_v40 }
 0x120   : > { %1791 = vst [vmem:[%s2145_s17 + $0xc0] sm:$0xff] %v1731_v45   ;;  %v792_v53 = vadd.f32 %v1910_v26, %v2130_v40  ;;  %v656_v54 = vadd.f32 %v2130_v40, %v655_v32  ;;  %v784_v55 = vadd.f32 %v2130_v40, %v783_v33  ;;  %v1009_v56 = vsel %vm881_vm9, %v789_v36, %v945_v47 }
 0x121   : > { %v975_v57 = vsel %vm847_vm10, %v653_v41, %v911_v48  ;;  %vm879_vm11 = vcmp.gt.f32.partialorder %v781_v49, 0.0  ;;  %v943_v58 = vmul.f32 0.01, %v781_v49  ;;  %v1882_v59 = vpop.f32.mrf.mxu0  ;;  %v1914_v60 = vpop.f32.mrf.mxu1  ;;  %vm850_vm12 = vcmp.gt.f32.partialorder %v664_v52, 0.0 }
 0x122   : > { %v914_v61 = vmul.f32 0.01, %v664_v52  ;;  %vm882_vm13 = vcmp.gt.f32.partialorder %v792_v53, 0.0  ;;  %v946_v62 = vmul.f32 0.01, %v792_v53  ;;  %vm848_vm14 = vcmp.gt.f32.partialorder %v656_v54, 0.0 }
 0x123   : > { %v1007_v63 = vsel %vm879_vm11, %v781_v49, %v943_v58  ;;  %v912_v0 = vmul.f32 0.01, %v656_v54  ;;  %vm880_vm15 = vcmp.gt.f32.partialorder %v784_v55, 0.0  ;;  %v671_v1 = vpop.f32.mrf.mxu0  ;;  %v799_v2 = vpop.f32.mrf.mxu1  ;;  %v944_v5 = vmul.f32 0.01, %v784_v55 }
 0x124   : > { %v978_v3 = vsel %vm850_vm12, %v664_v52, %v914_v61  ;;  %v1010_v4 = vsel %vm882_vm13, %v792_v53, %v946_v62  ;;  %v677_v6 = vadd.f32 %v1881_v42, %v2130_v40  ;;  %v805_v10 = vadd.f32 %v1913_v43, %v2130_v40 }
 0x125   : > { %v1666_v7 = vpack.c.bf16 %v978_v3, %v977_v46  ;;  %v1746_v8 = vpack.c.bf16 %v1010_v4, %v1009_v56  ;;  %v976_v9 = vsel %vm848_vm14, %v656_v54, %v912_v0  ;;  %v1885_v11 = vpop.f32.mrf.mxu0  ;;  %v1917_v12 = vpop.f32.mrf.mxu1  ;;  %v1008_v14 = vsel %vm880_vm15, %v784_v55, %v944_v5 }
 0x126   : > { %v1661_v13 = vpack.c.bf16 %v976_v9, %v975_v57  ;;  %vm853_vm0 = vcmp.gt.f32.partialorder %v677_v6, 0.0  ;;  %v917_v15 = vmul.f32 0.01, %v677_v6  ;;  %v1741_v16 = vpack.c.bf16 %v1008_v14, %v1007_v63 }
 0x127   : > { %1778 = vst [vmem:[%s2145_s17 + $0x58] sm:$0xff] %v1666_v7   ;;  %1794 = vst [vmem:[%s2145_s17 + $0xd8] sm:$0xff] %v1746_v8   ;;  %vm885_vm1 = vcmp.gt.f32.partialorder %v805_v10, 0.0  ;;  %v949_v17 = vmul.f32 0.01, %v805_v10  ;;  %v669_v18 = vadd.f32 %v2130_v40, %v668_v50  ;;  %v797_v19 = vadd.f32 %v2130_v40, %v796_v51  ;;  %v684_v25 = vpop.f32.mrf.mxu0  ;;  %v812_v26 = vpop.f32.mrf.mxu1 }
 0x128   : > { %1777 = vst [vmem:[%s2145_s17 + $0x50] sm:$0xff] %v1661_v13   ;;  %v680_v20 = vadd.f32 %v1882_v59, %v2130_v40  ;;  %v808_v21 = vadd.f32 %v1914_v60, %v2130_v40  ;;  %1793 = vst [vmem:[%s2145_s17 + $0xd0] sm:$0xff] %v1741_v16   ;;  %v981_v22 = vsel %vm853_vm0, %v677_v6, %v917_v15 }
 0x129   : > { %vm851_vm2 = vcmp.gt.f32.partialorder %v669_v18, 0.0  ;;  %v915_v23 = vmul.f32 0.01, %v669_v18  ;;  %v672_v24 = vadd.f32 %v2130_v40, %v671_v1  ;;  %v1013_v27 = vsel %vm885_vm1, %v805_v10, %v949_v17  ;;  %v1886_v39 = vpop.f32.mrf.mxu0  ;;  %v1918_v41 = vpop.f32.mrf.mxu1 }
 0x12a   : > { %vm883_vm3 = vcmp.gt.f32.partialorder %v797_v19, 0.0  ;;  %vm854_vm4 = vcmp.gt.f32.partialorder %v680_v20, 0.0  ;;  %v918_v28 = vmul.f32 0.01, %v680_v20  ;;  %v947_v29 = vmul.f32 0.01, %v797_v19 }
 0x12b   : > { %vm886_vm5 = vcmp.gt.f32.partialorder %v808_v21, 0.0  ;;  %v950_v30 = vmul.f32 0.01, %v808_v21  ;;  %vm852_vm6 = vcmp.gt.f32.partialorder %v672_v24, 0.0  ;;  %v979_v31 = vsel %vm851_vm2, %v669_v18, %v915_v23  ;;  %v687_v55 = vpop.f32.mrf.mxu0  ;;  %v815_v56 = vpop.f32.mrf.mxu1 }
 0x12c   : > { %v982_v32 = vsel %vm854_vm4, %v680_v20, %v918_v28  ;;  %v916_v33 = vmul.f32 0.01, %v672_v24  ;;  %v800_v34 = vadd.f32 %v2130_v40, %v799_v2  ;;  %v693_v37 = vadd.f32 %v1885_v11, %v2130_v40 }
 0x12d   : > { %v1676_v35 = vpack.c.bf16 %v982_v32, %v981_v22  ;;  %v1014_v36 = vsel %vm886_vm5, %v808_v21, %v950_v30  ;;  %v821_v38 = vadd.f32 %v1917_v12, %v2130_v40  ;;  %v1011_v45 = vsel %vm883_vm3, %v797_v19, %v947_v29 }
 0x12e   : > { %v1756_v42 = vpack.c.bf16 %v1014_v36, %v1013_v27  ;;  %v980_v43 = vsel %vm852_vm6, %v672_v24, %v916_v33  ;;  %vm884_vm7 = vcmp.gt.f32.partialorder %v800_v34, 0.0  ;;  %v948_v44 = vmul.f32 0.01, %v800_v34 }
 0x12f   : > { %1780 = vst [vmem:[%s2145_s17 + $0x68] sm:$0xff] %v1676_v35   ;;  %v1671_v46 = vpack.c.bf16 %v980_v43, %v979_v31  ;;  %vm857_vm8 = vcmp.gt.f32.partialorder %v693_v37, 0.0  ;;  %v921_v47 = vmul.f32 0.01, %v693_v37  ;;  %vm889_vm9 = vcmp.gt.f32.partialorder %v821_v38, 0.0 }
 0x130   : > { %1796 = vst [vmem:[%s2145_s17 + $0xe8] sm:$0xff] %v1756_v42   ;;  %v1012_v48 = vsel %vm884_vm7, %v800_v34, %v948_v44  ;;  %v953_v49 = vmul.f32 0.01, %v821_v38  ;;  %v685_v50 = vadd.f32 %v2130_v40, %v684_v25  ;;  %v813_v52 = vadd.f32 %v2130_v40, %v812_v26 }
 0x131   : > { %1779 = vst [vmem:[%s2145_s17 + $0x60] sm:$0xff] %v1671_v46   ;;  %v1751_v51 = vpack.c.bf16 %v1012_v48, %v1011_v45  ;;  %v696_v53 = vadd.f32 %v1886_v39, %v2130_v40  ;;  %v824_v54 = vadd.f32 %v1918_v41, %v2130_v40  ;;  %v985_v57 = vsel %vm857_vm8, %v693_v37, %v921_v47 }
 0x132   : > { %v1017_v58 = vsel %vm889_vm9, %v821_v38, %v953_v49  ;;  %v919_v60 = vmul.f32 0.01, %v685_v50  ;;  %v688_v62 = vadd.f32 %v2130_v40, %v687_v55  ;;  %v816_v63 = vadd.f32 %v2130_v40, %v815_v56 }
 0x133   : > { %1795 = vst [vmem:[%s2145_s17 + $0xe0] sm:$0xff] %v1751_v51   ;;  %vm858_vm10 = vcmp.gt.f32.partialorder %v696_v53, 0.0  ;;  %v922_v59 = vmul.f32 0.01, %v696_v53  ;;  %vm890_vm11 = vcmp.gt.f32.partialorder %v824_v54, 0.0  ;;  %vm855_vm12 = vcmp.gt.f32.partialorder %v685_v50, 0.0 }
 0x134   : > { %v954_v61 = vmul.f32 0.01, %v824_v54  ;;  %vm887_vm13 = vcmp.gt.f32.partialorder %v813_v52, 0.0  ;;  %v951_v0 = vmul.f32 0.01, %v813_v52  ;;  %vm856_vm14 = vcmp.gt.f32.partialorder %v688_v62, 0.0 }
 0x135   : > { %v986_v1 = vsel %vm858_vm10, %v696_v53, %v922_v59  ;;  %v920_v4 = vmul.f32 0.01, %v688_v62  ;;  %vm888_vm15 = vcmp.gt.f32.partialorder %v816_v63, 0.0  ;;  %v952_v6 = vmul.f32 0.01, %v816_v63 }
 0x136   : > { %v1686_v2 = vpack.c.bf16 %v986_v1, %v985_v57  ;;  %v1018_v3 = vsel %vm890_vm11, %v824_v54, %v954_v61  ;;  %v983_v7 = vsel %vm855_vm12, %v685_v50, %v919_v60  ;;  %v1015_v9 = vsel %vm887_vm13, %v813_v52, %v951_v0 }
 0x137   : > { %v1766_v5 = vpack.c.bf16 %v1018_v3, %v1017_v58  ;;  %v984_v8 = vsel %vm856_vm14, %v688_v62, %v920_v4  ;;  %v1016_v10 = vsel %vm888_vm15, %v816_v63, %v952_v6 }
 0x138   : > { %1782 = vst [vmem:[%s2145_s17 + $0x78] sm:$0xff] %v1686_v2   ;;  %v1681_v40 = vpack.c.bf16 %v984_v8, %v983_v7  ;;  %v1761_v11 = vpack.c.bf16 %v1016_v10, %v1015_v9 }
 0x139   : > { %1798 = vst [vmem:[%s2145_s17 + $0xf8] sm:$0xff] %v1766_v5  }
 0x13a   : > { %1781 = vst [vmem:[%s2145_s17 + $0x70] sm:$0xff] %v1681_v40   ;;  %1797 = vst [vmem:[%s2145_s17 + $0xf0] sm:$0xff] %v1761_v11  }
 0x13b PF: > { %s13_s14 = sadd.s32 1, %s2021_s14   ;;  %s2251_s12 = smov %s2017_s13 }
 0x13c   : > { %p10_p5 = scmp.ge.s32.totalorder %s13_s14, 4   ;;  %s2252_s13 = smov %s2254_s15 }
 0x13e   :  { %12 = sbr.rel (!%p10_p5) target bundleno = 2 (0x2), region = 62 }

</bundles_post_ra>
